<compile_context>
chip_gen: v7x
topology: tpu7x:2x2x1
jax: 0.10.0
libtpu: 0.0.40
codegen_flags: <defaults>
</compile_context>

<pallas_src>
import functools

import jax
import jax.numpy as jnp
from jax.experimental import pallas as pl
from jax.experimental.pallas import tpu as pltpu


def _round_up(x, m):
    return ((x + m - 1) // m) * m


def _device_defaults():
    """(max L tile, vmem_limit_bytes, gate dtype) per TPU generation."""
    try:
        kind = jax.devices()[0].device_kind.lower()
    except Exception:  # pragma: no cover - defensive
        kind = ""
    if "v7" in kind:
        # 64 MiB physical VMEM: cap the tile, modestly raise the scoped limit.
        return 4096, 40 * 1024 * 1024, jnp.bfloat16
    if "v6" in kind:
        # 128 MiB physical VMEM: big tiles + raised scoped limit, bf16 EUP.
        return 8192, 64 * 1024 * 1024, jnp.bfloat16
    # v5e (16 MiB default scoped VMEM) / v4 / unknown: conservative, f32 gates.
    return 2048, None, jnp.float32


def _convlstm_kernel(x_ref, h_ref, c_ref, w_ref, b_ref, h_out_ref, c_out_ref,
                     *, K, ctot_pad, kc_pad, gate_dtype):
    # x_ref    : (1, BT, C_in,  TL + 2*pad)  matmul dtype (bf16 by default)
    # h_ref    : (1, BT, C_hid, TL + 2*pad)  matmul dtype
    # c_ref    : (BT, C_hid, TL)             float32
    # w_ref    : (4H, kc_pad)                matmul dtype (aligned im2col weight)
    # b_ref    : (4H, 1)                     float32
    # h_out_ref: (BT, C_hid, TL)             h dtype (bf16 by default)
    # c_out_ref: (BT, C_hid, TL)             float32
    BT = c_ref.shape[0]
    H = c_ref.shape[1]
    TL = c_ref.shape[2]
    C_in = x_ref.shape[2]
    TLh = x_ref.shape[3]
    mmdt = w_ref.dtype

    row_pad = ctot_pad - (C_in + H)
    kc = K * ctot_pad

    # Zero blocks hoisted out of the batch loop (broadcasts are not CSE'd).
    zrows = jnp.zeros((row_pad, TLh), mmdt) if row_pad else None

    # ---- sublane-aligned im2col built directly in the matmul dtype ----
    # Channel order [h ; x ; zeros]: h (32 rows) leads so every segment start
    # is a multiple of the dtype row granule; tap blocks are ctot_pad rows.
    a_cols = []
    for b in range(BT):
        parts = [h_ref[0, b], x_ref[0, b]]
        if zrows is not None:
            parts.append(zrows)
        win = jnp.concatenate(parts, axis=0)              # (ctot_pad, TLh)
        # Tap-major stacking: tap k contributes win[:, k : k + TL].
        taps = [win[:, k:k + TL] for k in range(K)]
        a_cols.append(jnp.concatenate(taps, axis=0))      # (kc, TL)
    # Lane-pack the BT batches side by side -> one wide MXU matmul.
    a_col = a_cols[0] if BT == 1 else jnp.concatenate(a_cols, axis=1)
    if kc_pad > kc:
        a_col = jnp.concatenate(
            [a_col, jnp.zeros((kc_pad - kc, BT * TL), mmdt)], axis=0)

    # ---- single MXU matmul, f32 accumulation + bias ----
    z = jnp.dot(w_ref[...], a_col, preferred_element_type=jnp.float32)
    z = z + b_ref[...]                                    # (4H, BT*TL)

    # ---- LSTM gating: transcendentals in gate_dtype (bf16 on v6e/v7x),
    #      cell-state accumulation in f32 ----
    for b in range(BT):
        zb = z if BT == 1 else z[:, b * TL:(b + 1) * TL]  # (4H, TL) f32
        i_g = jax.nn.sigmoid(zb[0 * H:1 * H].astype(gate_dtype))
        f_g = jax.nn.sigmoid(zb[1 * H:2 * H].astype(gate_dtype))
        o_g = jax.nn.sigmoid(zb[2 * H:3 * H].astype(gate_dtype))
        g_g = jnp.tanh(zb[3 * H:4 * H].astype(gate_dtype))

        c_cur = c_ref[b]                                  # (H, TL) f32
        c_next = f_g.astype(jnp.float32) * c_cur + (i_g * g_g).astype(jnp.float32)
        h_next = o_g * jnp.tanh(c_next.astype(gate_dtype))

        h_out_ref[b] = h_next.astype(h_out_ref.dtype)
        c_out_ref[b] = c_next.astype(c_out_ref.dtype)


def conv_lstm_cell(x, h_cur, c_cur, weight, bias, kernel_size, *,
                   matmul_dtype=jnp.bfloat16,
                   h_dtype=jnp.bfloat16,     # pass jnp.float32 for exact parity
                   gate_dtype=None,          # None -> auto (bf16 on v6e/v7x)
                   l_tile=None,              # None -> per-generation default
                   vmem_limit_bytes=None,    # None -> per-generation default
                   alias_cell_state=False):  # alias c_cur -> c_next (rollouts)
    """ConvLSTMCell forward.

    x      : (B, C_in, L)   (PyTorch NCW layout)
    h_cur  : (B, C_hid, L)
    c_cur  : (B, C_hid, L)
    weight : (4*C_hid, C_in + C_hid, K)   (PyTorch Conv1d weight layout)
    bias   : (4*C_hid,)
    returns (h_next, c_next): h in `h_dtype` (bf16), c in float32.
    """
    B, C_in, L = x.shape
    C_hid = h_cur.shape[1]
    K = int(kernel_size)
    assert K % 2 == 1, (
        "Pallas ConvLSTMCell requires odd kernel_size: PyTorch Conv1d with "
        "padding=K//2 changes the sequence length for even K.")
    Ctot = C_in + C_hid
    H4 = 4 * C_hid
    assert weight.shape == (H4, Ctot, K)
    pad = K // 2

    tl_def, vmem_def, gate_def = _device_defaults()
    l_tile = tl_def if l_tile is None else int(l_tile)
    if vmem_limit_bytes is None:
        vmem_limit_bytes = vmem_def
    if gate_dtype is None:
        gate_dtype = gate_def

    # ---- L tiling (halo-aware) ----
    if L <= l_tile:
        TL, nL = L, 1                      # single tile: full-L block
    else:
        TL = max(128, (l_tile // 128) * 128)   # blocked L tiles must be lane aligned
        nL = -(-L // TL)
    L_pad = nL * TL
    TLh = TL + 2 * pad

    # ---- sublane-aligned im2col weight (tiny, built once in the wrapper) ----
    itemsize = jnp.dtype(matmul_dtype).itemsize
    row_align = 8 * max(1, 4 // itemsize)      # 8 rows for f32, 16 for bf16
    Ctot_pad = _round_up(Ctot, row_align)
    KC = K * Ctot_pad
    KC_pad = max(KC, 128)                      # e.g. 3*40=120 -> 128 (f32 path)

    # Reorder input channels to [h-part ; x-part] (matches the kernel's concat),
    # zero-pad to Ctot_pad, flatten tap-major, pad the contraction, cast bf16.
    w_hx = jnp.concatenate([weight[:, C_in:, :], weight[:, :C_in, :]], axis=1)
    if Ctot_pad > Ctot:
        w_hx = jnp.pad(w_hx, ((0, 0), (0, Ctot_pad - Ctot), (0, 0)))
    w_col = jnp.transpose(w_hx, (0, 2, 1)).reshape(H4, KC)
    if KC_pad > KC:
        w_col = jnp.pad(w_col, ((0, 0), (0, KC_pad - KC)))
    w_col = w_col.astype(matmul_dtype)
    b_col = bias.reshape(H4, 1).astype(jnp.float32)

    # ---- halo'd L windows of x and h ----
    # One fused pad+stack pass in the wrapper (the bf16 cast fuses into it, so
    # there is no standalone astype pass over x/h).  This is the price for
    # expressing overlapping (TL + 2*pad) tiles with plain Blocked BlockSpecs.
    # TODO(synk): for very large nL, build the windows with a single strided
    # gather (conv_general_dilated_patches) instead of nL slices.
    def _windows(a):
        ap = jnp.pad(a.astype(matmul_dtype),
                     ((0, 0), (0, 0), (pad, pad + L_pad - L)))
        return jnp.stack([ap[:, :, t * TL:t * TL + TLh] for t in range(nL)],
                         axis=0)                      # (nL, B, C, TLh)

    x_win = _windows(x)
    h_win = _windows(h_cur)

    c_f = c_cur.astype(jnp.float32)
    if L_pad != L:
        c_f = jnp.pad(c_f, ((0, 0), (0, 0), (0, L_pad - L)))

    # ---- batch tile: lane-pack batches when the L tile is narrow ----
    cap = max(1, 256 // max(TL, 1))
    b_tile = 1
    for d in range(min(B, cap), 0, -1):
        if B % d == 0:
            b_tile = d
            break
    grid = (B // b_tile, nL)

    kernel = functools.partial(
        _convlstm_kernel, K=K, ctot_pad=Ctot_pad, kc_pad=KC_pad,
        gate_dtype=gate_dtype)

    cp_kwargs = dict(dimension_semantics=("parallel", "parallel"))
    if vmem_limit_bytes is not None:
        cp_kwargs["vmem_limit_bytes"] = int(vmem_limit_bytes)

    h_next, c_next = pl.pallas_call(
        kernel,
        out_shape=(
            jax.ShapeDtypeStruct((B, C_hid, L_pad), h_dtype),
            jax.ShapeDtypeStruct((B, C_hid, L_pad), jnp.float32),
        ),
        grid_spec=pltpu.PrefetchScalarGridSpec(
            num_scalar_prefetch=0,
            grid=grid,
            in_specs=[
                pl.BlockSpec((1, b_tile, C_in, TLh), lambda bi, ti: (ti, bi, 0, 0)),
                pl.BlockSpec((1, b_tile, C_hid, TLh), lambda bi, ti: (ti, bi, 0, 0)),
                pl.BlockSpec((b_tile, C_hid, TL), lambda bi, ti: (bi, 0, ti)),
                pl.BlockSpec((H4, KC_pad), lambda bi, ti: (0, 0)),
                pl.BlockSpec((H4, 1), lambda bi, ti: (0, 0)),
            ],
            out_specs=[
                pl.BlockSpec((b_tile, C_hid, TL), lambda bi, ti: (bi, 0, ti)),
                pl.BlockSpec((b_tile, C_hid, TL), lambda bi, ti: (bi, 0, ti)),
            ],
        ),
        compiler_params=pltpu.CompilerParams(**cp_kwargs),
        # For recurrent rollouts, reuse the c_cur HBM buffer for c_next.
        input_output_aliases={2: 1} if alias_cell_state else {},
    )(x_win, h_win, c_f, w_col, b_col)

    if L_pad != L:
        h_next = h_next[:, :, :L]
        c_next = c_next[:, :, :L]
    return h_next, c_next


def _reference(x, h_cur, c_cur, weight, bias, kernel_size,
               conv_dtype=jnp.float32):
    """Pure-JAX reference (same math as the PyTorch module)."""
    pad = kernel_size // 2
    combined = jnp.concatenate([x, h_cur], axis=1).astype(conv_dtype)
    z = jax.lax.conv_general_dilated(
        combined, weight.astype(conv_dtype), window_strides=(1,),
        padding=[(pad, pad)], dimension_numbers=("NCH", "OIH", "NCH"),
        preferred_element_type=jnp.float32)
    z = z + bias.reshape(1, -1, 1).astype(jnp.float32)
    cc_i, cc_f, cc_o, cc_g = jnp.split(z, 4, axis=1)
    i = jax.nn.sigmoid(cc_i)
    f = jax.nn.sigmoid(cc_f)
    o = jax.nn.sigmoid(cc_o)
    g = jnp.tanh(cc_g)
    c_next = f * c_cur.astype(jnp.float32) + i * g
    h_next = o * jnp.tanh(c_next)
    return h_next, c_next


if __name__ == "__main__":
    # Small deterministic shapes consistent with the module.
    B = 2          # batch
    C_in = 4       # input_channels
    C_hid = 32     # hidden_channels
    L = 16         # sequence length (Conv1d spatial dim)
    K = 3          # kernel_size

    key = jax.random.PRNGKey(0)
    kx, kh, kc, kw, kb = jax.random.split(key, 5)

    x = jax.random.normal(kx, (B, C_in, L), dtype=jnp.float32)
    h_cur = jax.random.normal(kh, (B, C_hid, L), dtype=jnp.float32)
    c_cur = jax.random.normal(kc, (B, C_hid, L), dtype=jnp.float32)

    weight = 0.1 * jax.random.normal(kw, (4 * C_hid, C_in + C_hid, K),
                                     dtype=jnp.float32)
    bias = 0.1 * jax.random.normal(kb, (4 * C_hid,), dtype=jnp.float32)

    h_next, c_next = conv_lstm_cell(x, h_cur, c_cur, weight, bias, K)
    jax.block_until_ready((h_next, c_next))

    h32 = h_next.astype(jnp.float32)
    c32 = c_next.astype(jnp.float32)

    # Check vs a reference whose conv operands are rounded to bf16 the same
    # way the kernel rounds them (residual = bf16 h/gates + accumulation order).
    h_r16, c_r16 = _reference(x, h_cur, c_cur, weight, bias, K,
                              conv_dtype=jnp.bfloat16)
    assert jnp.allclose(h32, h_r16, atol=5e-2, rtol=5e-2)
    assert jnp.allclose(c32, c_r16, atol=5e-2, rtol=5e-2)

    # Sanity check vs the full-f32 reference (bf16 error budget).
    h_r32, c_r32 = _reference(x, h_cur, c_cur, weight, bias, K,
                              conv_dtype=jnp.float32)
    assert jnp.allclose(h32, h_r32, atol=1e-1, rtol=1e-1)
    assert jnp.allclose(c32, c_r32, atol=1e-1, rtol=1e-1)

    print("KERNEL_OK")
</pallas_src>

<mosaic_0001>
module attributes {stable_mosaic.version = 11 : i64} {
  func.func @_convlstm_kernel(%arg0: i32, %arg1: i32, %arg2: memref<1x2x4x18xbf16, #tpu.memory_space<vmem>>, %arg3: memref<1x2x32x18xbf16, #tpu.memory_space<vmem>>, %arg4: memref<2x32x16xf32, #tpu.memory_space<vmem>>, %arg5: memref<128x144xbf16, #tpu.memory_space<vmem>>, %arg6: memref<128x1xf32, #tpu.memory_space<vmem>>, %arg7: memref<2x32x16xbf16, #tpu.memory_space<vmem>>, %arg8: memref<2x32x16xf32, #tpu.memory_space<vmem>>) attributes {dimension_semantics = [#tpu.dimension_semantics<parallel>, #tpu.dimension_semantics<parallel>], iteration_bounds = array<i64: 1, 1>, scalar_prefetch = 0 : i64, scratch_operands = 0 : i64, tpu.core_type = #tpu.core_type<tc>, window_params = [{transform_indices = @transform_0, window_bounds = array<i64: 1, 2, 4, 18>}, {transform_indices = @transform_1, window_bounds = array<i64: 1, 2, 32, 18>}, {transform_indices = @transform_2, window_bounds = array<i64: 2, 32, 16>}, {pipeline_mode = #tpu.pipeline_mode<synchronous>, transform_indices = @transform_3, window_bounds = array<i64: 128, 144>}, {pipeline_mode = #tpu.pipeline_mode<synchronous>, transform_indices = @transform_4, window_bounds = array<i64: 128, 1>}, {transform_indices = @transform_5, window_bounds = array<i64: 2, 32, 16>}, {transform_indices = @transform_6, window_bounds = array<i64: 2, 32, 16>}]} {
    %cst = arith.constant 0.000000e+00 : bf16
    %0 = vector.broadcast %cst : bf16 to vector<12x18xbf16>
    %c0 = arith.constant 0 : index
    %c0_0 = arith.constant 0 : index
    %c0_1 = arith.constant 0 : index
    %c0_2 = arith.constant 0 : index
    %1 = vector.load %arg3[%c0, %c0_0, %c0_1, %c0_2] : memref<1x2x32x18xbf16, #tpu.memory_space<vmem>>, vector<1x1x32x18xbf16>
    %2 = vector.shape_cast %1 : vector<1x1x32x18xbf16> to vector<32x18xbf16>
    %c0_3 = arith.constant 0 : index
    %c0_4 = arith.constant 0 : index
    %c0_5 = arith.constant 0 : index
    %c0_6 = arith.constant 0 : index
    %3 = vector.load %arg2[%c0_3, %c0_4, %c0_5, %c0_6] : memref<1x2x4x18xbf16, #tpu.memory_space<vmem>>, vector<1x1x4x18xbf16>
    %4 = vector.shape_cast %3 : vector<1x1x4x18xbf16> to vector<4x18xbf16>
    %5 = tpu.concatenate %2, %4, %0 in 0 : vector<32x18xbf16>, vector<4x18xbf16>, vector<12x18xbf16> -> vector<48x18xbf16>
    %6 = vector.extract_strided_slice %5 {offsets = [0, 0], sizes = [48, 16], strides = [1, 1]} : vector<48x18xbf16> to vector<48x16xbf16>
    %7 = vector.extract_strided_slice %5 {offsets = [0, 1], sizes = [48, 16], strides = [1, 1]} : vector<48x18xbf16> to vector<48x16xbf16>
    %8 = vector.extract_strided_slice %5 {offsets = [0, 2], sizes = [48, 16], strides = [1, 1]} : vector<48x18xbf16> to vector<48x16xbf16>
    %9 = tpu.concatenate %6, %7, %8 in 0 : vector<48x16xbf16>, vector<48x16xbf16>, vector<48x16xbf16> -> vector<144x16xbf16>
    %c0_7 = arith.constant 0 : index
    %c1 = arith.constant 1 : index
    %c0_8 = arith.constant 0 : index
    %c0_9 = arith.constant 0 : index
    %10 = vector.load %arg3[%c0_7, %c1, %c0_8, %c0_9] : memref<1x2x32x18xbf16, #tpu.memory_space<vmem>>, vector<1x1x32x18xbf16>
    %11 = vector.shape_cast %10 : vector<1x1x32x18xbf16> to vector<32x18xbf16>
    %c0_10 = arith.constant 0 : index
    %c1_11 = arith.constant 1 : index
    %c0_12 = arith.constant 0 : index
    %c0_13 = arith.constant 0 : index
    %12 = vector.load %arg2[%c0_10, %c1_11, %c0_12, %c0_13] : memref<1x2x4x18xbf16, #tpu.memory_space<vmem>>, vector<1x1x4x18xbf16>
    %13 = vector.shape_cast %12 : vector<1x1x4x18xbf16> to vector<4x18xbf16>
    %14 = tpu.concatenate %11, %13, %0 in 0 : vector<32x18xbf16>, vector<4x18xbf16>, vector<12x18xbf16> -> vector<48x18xbf16>
    %15 = vector.extract_strided_slice %14 {offsets = [0, 0], sizes = [48, 16], strides = [1, 1]} : vector<48x18xbf16> to vector<48x16xbf16>
    %16 = vector.extract_strided_slice %14 {offsets = [0, 1], sizes = [48, 16], strides = [1, 1]} : vector<48x18xbf16> to vector<48x16xbf16>
    %17 = vector.extract_strided_slice %14 {offsets = [0, 2], sizes = [48, 16], strides = [1, 1]} : vector<48x18xbf16> to vector<48x16xbf16>
    %18 = tpu.concatenate %15, %16, %17 in 0 : vector<48x16xbf16>, vector<48x16xbf16>, vector<48x16xbf16> -> vector<144x16xbf16>
    %19 = tpu.concatenate %9, %18 in 1 : vector<144x16xbf16>, vector<144x16xbf16> -> vector<144x32xbf16>
    %c0_14 = arith.constant 0 : index
    %c0_15 = arith.constant 0 : index
    %20 = vector.load %arg5[%c0_14, %c0_15] : memref<128x144xbf16, #tpu.memory_space<vmem>>, vector<128x144xbf16>
    %cst_16 = arith.constant dense<0.000000e+00> : vector<128x32xf32>
    %21 = tpu.matmul %20, %19, %cst_16 {dimension_numbers = #tpu.dot_dimension_numbers<[1], [0], [0], [1], [0, 0, 1, 1], [], []>} : vector<128x144xbf16>, vector<144x32xbf16>, vector<128x32xf32> -> vector<128x32xf32>
    %c0_17 = arith.constant 0 : index
    %c0_18 = arith.constant 0 : index
    %22 = vector.load %arg6[%c0_17, %c0_18] : memref<128x1xf32, #tpu.memory_space<vmem>>, vector<128x1xf32>
    %23 = vector.broadcast %22 : vector<128x1xf32> to vector<128x32xf32>
    %24 = arith.addf %21, %23 : vector<128x32xf32>
    %25 = vector.extract_strided_slice %24 {offsets = [0, 0], sizes = [128, 16], strides = [1, 1]} : vector<128x32xf32> to vector<128x16xf32>
    %26 = vector.extract_strided_slice %25 {offsets = [0, 0], sizes = [32, 16], strides = [1, 1]} : vector<128x16xf32> to vector<32x16xf32>
    %27 = arith.negf %26 : vector<32x16xf32>
    %28 = math.exp %27 : vector<32x16xf32>
    %cst_19 = arith.constant 1.000000e+00 : f32
    %29 = vector.broadcast %cst_19 : f32 to vector<32x16xf32>
    %30 = arith.addf %29, %28 : vector<32x16xf32>
    %31 = arith.divf %29, %30 : vector<32x16xf32>
    %32 = vector.extract_strided_slice %25 {offsets = [32, 0], sizes = [32, 16], strides = [1, 1]} : vector<128x16xf32> to vector<32x16xf32>
    %33 = arith.negf %32 : vector<32x16xf32>
    %34 = math.exp %33 : vector<32x16xf32>
    %cst_20 = arith.constant 1.000000e+00 : f32
    %35 = vector.broadcast %cst_20 : f32 to vector<32x16xf32>
    %36 = arith.addf %35, %34 : vector<32x16xf32>
    %37 = arith.divf %35, %36 : vector<32x16xf32>
    %38 = vector.extract_strided_slice %25 {offsets = [64, 0], sizes = [32, 16], strides = [1, 1]} : vector<128x16xf32> to vector<32x16xf32>
    %39 = arith.negf %38 : vector<32x16xf32>
    %40 = math.exp %39 : vector<32x16xf32>
    %cst_21 = arith.constant 1.000000e+00 : f32
    %41 = vector.broadcast %cst_21 : f32 to vector<32x16xf32>
    %42 = arith.addf %41, %40 : vector<32x16xf32>
    %43 = arith.divf %41, %42 : vector<32x16xf32>
    %44 = vector.extract_strided_slice %25 {offsets = [96, 0], sizes = [32, 16], strides = [1, 1]} : vector<128x16xf32> to vector<32x16xf32>
    %45 = math.tanh %44 : vector<32x16xf32>
    %c0_22 = arith.constant 0 : index
    %c0_23 = arith.constant 0 : index
    %c0_24 = arith.constant 0 : index
    %46 = vector.load %arg4[%c0_22, %c0_23, %c0_24] : memref<2x32x16xf32, #tpu.memory_space<vmem>>, vector<1x32x16xf32>
    %47 = vector.shape_cast %46 : vector<1x32x16xf32> to vector<32x16xf32>
    %48 = arith.mulf %37, %47 : vector<32x16xf32>
    %49 = arith.mulf %31, %45 : vector<32x16xf32>
    %50 = arith.addf %48, %49 : vector<32x16xf32>
    %51 = math.tanh %50 : vector<32x16xf32>
    %52 = arith.mulf %43, %51 : vector<32x16xf32>
    %53 = arith.truncf %52 : vector<32x16xf32> to vector<32x16xbf16>
    %c0_25 = arith.constant 0 : index
    %c0_26 = arith.constant 0 : index
    %c0_27 = arith.constant 0 : index
    %54 = vector.load %arg7[%c0_25, %c0_26, %c0_27] : memref<2x32x16xbf16, #tpu.memory_space<vmem>>, vector<1x32x16xbf16>
    %55 = vector.shape_cast %54 : vector<1x32x16xbf16> to vector<32x16xbf16>
    %56 = vector.shape_cast %53 : vector<32x16xbf16> to vector<1x32x16xbf16>
    tpu.vector_store %arg7[%c0_25, %c0_26, %c0_27], %56 {strides = array<i32>} : memref<2x32x16xbf16, #tpu.memory_space<vmem>>, vector<1x32x16xbf16>,
    %c0_28 = arith.constant 0 : index
    %c0_29 = arith.constant 0 : index
    %c0_30 = arith.constant 0 : index
    %57 = vector.load %arg8[%c0_28, %c0_29, %c0_30] : memref<2x32x16xf32, #tpu.memory_space<vmem>>, vector<1x32x16xf32>
    %58 = vector.shape_cast %57 : vector<1x32x16xf32> to vector<32x16xf32>
    %59 = vector.shape_cast %50 : vector<32x16xf32> to vector<1x32x16xf32>
    tpu.vector_store %arg8[%c0_28, %c0_29, %c0_30], %59 {strides = array<i32>} : memref<2x32x16xf32, #tpu.memory_space<vmem>>, vector<1x32x16xf32>,
    %60 = vector.extract_strided_slice %24 {offsets = [0, 16], sizes = [128, 16], strides = [1, 1]} : vector<128x32xf32> to vector<128x16xf32>
    %61 = vector.extract_strided_slice %60 {offsets = [0, 0], sizes = [32, 16], strides = [1, 1]} : vector<128x16xf32> to vector<32x16xf32>
    %62 = arith.negf %61 : vector<32x16xf32>
    %63 = math.exp %62 : vector<32x16xf32>
    %cst_31 = arith.constant 1.000000e+00 : f32
    %64 = vector.broadcast %cst_31 : f32 to vector<32x16xf32>
    %65 = arith.addf %64, %63 : vector<32x16xf32>
    %66 = arith.divf %64, %65 : vector<32x16xf32>
    %67 = vector.extract_strided_slice %60 {offsets = [32, 0], sizes = [32, 16], strides = [1, 1]} : vector<128x16xf32> to vector<32x16xf32>
    %68 = arith.negf %67 : vector<32x16xf32>
    %69 = math.exp %68 : vector<32x16xf32>
    %cst_32 = arith.constant 1.000000e+00 : f32
    %70 = vector.broadcast %cst_32 : f32 to vector<32x16xf32>
    %71 = arith.addf %70, %69 : vector<32x16xf32>
    %72 = arith.divf %70, %71 : vector<32x16xf32>
    %73 = vector.extract_strided_slice %60 {offsets = [64, 0], sizes = [32, 16], strides = [1, 1]} : vector<128x16xf32> to vector<32x16xf32>
    %74 = arith.negf %73 : vector<32x16xf32>
    %75 = math.exp %74 : vector<32x16xf32>
    %cst_33 = arith.constant 1.000000e+00 : f32
    %76 = vector.broadcast %cst_33 : f32 to vector<32x16xf32>
    %77 = arith.addf %76, %75 : vector<32x16xf32>
    %78 = arith.divf %76, %77 : vector<32x16xf32>
    %79 = vector.extract_strided_slice %60 {offsets = [96, 0], sizes = [32, 16], strides = [1, 1]} : vector<128x16xf32> to vector<32x16xf32>
    %80 = math.tanh %79 : vector<32x16xf32>
    %c1_34 = arith.constant 1 : index
    %c0_35 = arith.constant 0 : index
    %c0_36 = arith.constant 0 : index
    %81 = vector.load %arg4[%c1_34, %c0_35, %c0_36] : memref<2x32x16xf32, #tpu.memory_space<vmem>>, vector<1x32x16xf32>
    %82 = vector.shape_cast %81 : vector<1x32x16xf32> to vector<32x16xf32>
    %83 = arith.mulf %72, %82 : vector<32x16xf32>
    %84 = arith.mulf %66, %80 : vector<32x16xf32>
    %85 = arith.addf %83, %84 : vector<32x16xf32>
    %86 = math.tanh %85 : vector<32x16xf32>
    %87 = arith.mulf %78, %86 : vector<32x16xf32>
    %88 = arith.truncf %87 : vector<32x16xf32> to vector<32x16xbf16>
    %c1_37 = arith.constant 1 : index
    %c0_38 = arith.constant 0 : index
    %c0_39 = arith.constant 0 : index
    %89 = vector.load %arg7[%c1_37, %c0_38, %c0_39] : memref<2x32x16xbf16, #tpu.memory_space<vmem>>, vector<1x32x16xbf16>
    %90 = vector.shape_cast %89 : vector<1x32x16xbf16> to vector<32x16xbf16>
    %91 = vector.shape_cast %88 : vector<32x16xbf16> to vector<1x32x16xbf16>
    tpu.vector_store %arg7[%c1_37, %c0_38, %c0_39], %91 {strides = array<i32>} : memref<2x32x16xbf16, #tpu.memory_space<vmem>>, vector<1x32x16xbf16>,
    %c1_40 = arith.constant 1 : index
    %c0_41 = arith.constant 0 : index
    %c0_42 = arith.constant 0 : index
    %92 = vector.load %arg8[%c1_40, %c0_41, %c0_42] : memref<2x32x16xf32, #tpu.memory_space<vmem>>, vector<1x32x16xf32>
    %93 = vector.shape_cast %92 : vector<1x32x16xf32> to vector<32x16xf32>
    %94 = vector.shape_cast %85 : vector<32x16xf32> to vector<1x32x16xf32>
    tpu.vector_store %arg8[%c1_40, %c0_41, %c0_42], %94 {strides = array<i32>} : memref<2x32x16xf32, #tpu.memory_space<vmem>>, vector<1x32x16xf32>,
    return
  }
  func.func @transform_0(%arg0: i32, %arg1: i32) -> (i32, i32, i32, i32) {
    %c0_i32 = arith.constant 0 : i32
    %c0_i32_0 = arith.constant 0 : i32
    %c0_i32_1 = arith.constant 0 : i32
    return %arg1, %arg0, %c0_i32, %c0_i32_0 : i32, i32, i32, i32
  }
  func.func @transform_1(%arg0: i32, %arg1: i32) -> (i32, i32, i32, i32) {
    %c0_i32 = arith.constant 0 : i32
    %c0_i32_0 = arith.constant 0 : i32
    %c0_i32_1 = arith.constant 0 : i32
    return %arg1, %arg0, %c0_i32, %c0_i32_0 : i32, i32, i32, i32
  }
  func.func @transform_2(%arg0: i32, %arg1: i32) -> (i32, i32, i32) {
    %c0_i32 = arith.constant 0 : i32
    %c0_i32_0 = arith.constant 0 : i32
    return %arg0, %c0_i32, %arg1 : i32, i32, i32
  }
  func.func @transform_3(%arg0: i32, %arg1: i32) -> (i32, i32) {
    %c0_i32 = arith.constant 0 : i32
    %c0_i32_0 = arith.constant 0 : i32
    %c0_i32_1 = arith.constant 0 : i32
    return %c0_i32, %c0_i32_0 : i32, i32
  }
  func.func @transform_4(%arg0: i32, %arg1: i32) -> (i32, i32) {
    %c0_i32 = arith.constant 0 : i32
    %c0_i32_0 = arith.constant 0 : i32
    %c0_i32_1 = arith.constant 0 : i32
    return %c0_i32, %c0_i32_0 : i32, i32
  }
  func.func @transform_5(%arg0: i32, %arg1: i32) -> (i32, i32, i32) {
    %c0_i32 = arith.constant 0 : i32
    %c0_i32_0 = arith.constant 0 : i32
    return %arg0, %c0_i32, %arg1 : i32, i32, i32
  }
  func.func @transform_6(%arg0: i32, %arg1: i32) -> (i32, i32, i32) {
    %c0_i32 = arith.constant 0 : i32
    %c0_i32_0 = arith.constant 0 : i32
    return %arg0, %c0_i32, %arg1 : i32, i32, i32
  }
}

</mosaic_0001>

<bundles_post_ra>
// kernel: tpu_custom_call.1
= control target key start
LH: loop header
LB: loop body
LE: loop exit
PB: predicated region body
PF: predicated region fallthrough
CT: control target
= control target key end

     0   :  { %vm38_vm0 = vcmask 1041408   ;;  %s864_s25 = smov 127   ;;  %s865_s28 = smov 126   ;;  %v866_v4 = vmov 0   ;;  %vm105_vm1 = vcmask 130048   ;;  %vm562_vm2 = vcmask 125952   ;;  %s1181_s1 = inlined_call_operand.vmem [shape: bf16[1,2,32,18], index: 1, kind: input, shape index: {}]   ;;  %s1182_s0 = inlined_call_operand.vmem [shape: bf16[1,2,4,18], index: 0, kind: input, shape index: {}]   ;;  %s1183_s3 = inlined_call_operand.vmem [shape: bf16[128,144], index: 3, kind: input, shape index: {}]   ;;  %s1184_s4 = inlined_call_operand.vmem [shape: f32[128,1], index: 4, kind: input, shape index: {}]   ;;  %s1185_s2 = inlined_call_operand.vmem [shape: f32[2,32,16], index: 2, kind: input, shape index: {}]   ;;  %s1186_s6 = inlined_call_operand.vmem [shape: f32[2,32,16], index: 6, kind: output, shape index: {1}]   ;;  %s1187_s5 = inlined_call_operand.vmem [shape: bf16[2,32,16], index: 5, kind: output, shape index: {0}]  }
   0x1   :  { %v764_v0 = vld [vmem:[%s1181_s1 + $0x10] sm:$0xff]   ;;  %v765_v1 = vld [vmem:[%s1181_s1 + $0x18] sm:$0xff]   ;;  %v672_v2 = vld [vmem:[%s1182_s0 + $0x2] sm:$0x3]  ;;  %349 = vmatprep.subr.bf16.mxu0 %v866_v4  ;;  %739 = vmatprep.subr.bf16.mxu1 %v866_v4  ;;  %s867_s29 = smov 16   ;;  %s868_s10 = smov 112  }
   0x2   :  { %75 = vrot.lane.b32.xlu0 %v764_v0, %s864_s25  ;;  %v73_v3 = vsel %vm38_vm0, %v672_v2, 0  ;;  %762 = vset.pattern.permute.xlu1 %v866_v4  ;;  %v766_v5 = vld [vmem:[%s1181_s1] sm:$0xff]   ;;  %v767_v6 = vld [vmem:[%s1181_s1 + $0x8] sm:$0xff]   ;;  %v159_v25 = vld [vmem:[%s1184_s4 + $0x10] sm:$0xff] }
   0x3   :  { %79 = vrot.lane.b32.xlu1 %v73_v3, %s864_s25  ;;  %763 = vset.pattern.permute.xlu0 %v866_v4  ;;  %v27_v7 = vld [vmem:[%s1182_s0] sm:$0x3]  ;;  %v770_v15 = vld [vmem:[%s1183_s3 + $0x4] ss:$8 sps:$4 sm:$0xff]   ;;  %v160_v27 = vld [vmem:[%s1184_s4 + $0x18] sm:$0xff] }
   0x4   :  { %v41_v8 = vsel %vm38_vm0, %v27_v7, 0  ;;  %v773_v16 = vld [vmem:[%s1183_s3 + $0x44] ss:$8 sps:$4 sm:$0xff]   ;;  %691 = vmatprep.mubr.msk.bf16.mxu0 %vm105_vm1, %v770_v15  ;;  %v163_v28 = vld [vmem:[%s1184_s4 + $0x30] sm:$0xff]  ;;  %v164_v31 = vld [vmem:[%s1184_s4 + $0x38] sm:$0xff] }
   0x5   :  { %695 = vmatprep.mubr.msk.bf16.mxu1 %vm105_vm1, %v773_v16  ;;  %v157_v23 = vld [vmem:[%s1184_s4] sm:$0xff]  ;;  %v158_v24 = vld [vmem:[%s1184_s4 + $0x8] sm:$0xff]  ;;  %v167_v32 = vld [vmem:[%s1184_s4 + $0x50] sm:$0xff] }
   0x6   :  { %77 = vrot.lane.b32.xlu0 %v765_v1, %s864_s25  ;;  %v161_v26 = vld [vmem:[%s1184_s4 + $0x20] sm:$0xff]  ;;  %v162_v29 = vld [vmem:[%s1184_s4 + $0x28] sm:$0xff]  ;;  %v168_v35 = vld [vmem:[%s1184_s4 + $0x58] sm:$0xff] }
   0x7   :  { %81 = vrot.lane.b32.xlu1 %v764_v0, %s865_s28  ;;  %v165_v30 = vld [vmem:[%s1184_s4 + $0x40] sm:$0xff]  ;;  %v166_v33 = vld [vmem:[%s1184_s4 + $0x48] sm:$0xff]  ;;  %v171_v36 = vld [vmem:[%s1184_s4 + $0x70] sm:$0xff] }
   0x8   :  { %v169_v34 = vld [vmem:[%s1184_s4 + $0x60] sm:$0xff]  ;;  %v170_v37 = vld [vmem:[%s1184_s4 + $0x68] sm:$0xff]  ;;  %v172_v39 = vld [vmem:[%s1184_s4 + $0x78] sm:$0xff] }
   0x9   :  { %v715_v38 = vld [vmem:[%s1185_s2 + $0x20] sm:$0xff]  ;;  %v717_v40 = vld [vmem:[%s1185_s2 + $0x30] sm:$0xff]  ;;  %v716_v41 = vld [vmem:[%s1185_s2 + $0x28] sm:$0xff] }
   0xa   :  { %83 = vrot.lane.b32.xlu0 %v765_v1, %s865_s28  ;;  %v718_v42 = vld [vmem:[%s1185_s2 + $0x38] sm:$0xff]  ;;  %v768_v61 = vld [vmem:[%s1183_s3] ss:$8 sps:$4 sm:$0xff]  }
   0xb   :  { %85 = vrot.lane.b32.xlu1 %v73_v3, %s865_s28  ;;  %v771_v62 = vld [vmem:[%s1183_s3 + $0x40] ss:$8 sps:$4 sm:$0xff]   ;;  %v774_v63 = vld [vmem:[%s1183_s3 + $0x14] ss:$8 sps:$4 sm:$0xff]   ;;  %v779_v2 = vld [vmem:[%s1183_s3 + $0x50] ss:$8 sps:$4 sm:$0xff]  }
   0xc   :  { %v786_v7 = vld [vmem:[%s1183_s3 + $0x34] ss:$8 sps:$4 sm:$0xff]  }
   0xe   :  { %87 = vrot.lane.b32.xlu0 %v764_v0, %s867_s29  ;;  %v776_v0 = vld [vmem:[%s1183_s3 + $0x54] ss:$8 sps:$4 sm:$0xff]  }
   0xf   :  { %89 = vrot.lane.b32.xlu1 %v765_v1, %s867_s29  ;;  %v778_v1 = vld [vmem:[%s1183_s3 + $0x10] ss:$8 sps:$4 sm:$0xff]  }
  0x12   :  { %91 = vrot.lane.b32.xlu0 %v73_v3, %s867_s29  ;;  %v780_v3 = vld [vmem:[%s1183_s3 + $0x24] ss:$8 sps:$4 sm:$0xff]  }
  0x13   :  { %43 = vrot.lane.b32.xlu1 %v766_v5, %s864_s25 }
  0x17   :  { %45 = vrot.lane.b32.xlu1 %v767_v6, %s864_s25 }
  0x1b   :  { %47 = vrot.lane.b32.xlu1 %v41_v8, %s864_s25 }
  0x1f   :  { %49 = vrot.lane.b32.xlu1 %v766_v5, %s865_s28 }
  0x23   :  { %51 = vrot.lane.b32.xlu1 %v767_v6, %s865_s28 }
  0x27   :  { %53 = vrot.lane.b32.xlu1 %v41_v8, %s865_s28 }
  0x2b   :  { %175 = vperm.xlu1 %762, %v157_v23  }
  0x2f   :  { %185 = vperm.xlu1 %762, %v159_v25  }
  0x33   :  { %190 = vperm.xlu1 %762, %v160_v27  }
  0x37   :  { %200 = vperm.xlu1 %762, %v162_v29  }
  0x3b   :  { %210 = vperm.xlu1 %762, %v164_v31  }
  0x3f   :  { %220 = vperm.xlu1 %762, %v166_v33  }
  0x43   :  { %230 = vperm.xlu1 %762, %v168_v35  }
  0x47   :  { %240 = vperm.xlu1 %762, %v170_v37  }
  0x4b   :  { %250 = vperm.xlu1 %762, %v172_v39  }
  0x4f   :  { %582 = vrot.lane.b32.xlu1 %v716_v41, %s867_s29 }
  0x53   :  { %586 = vrot.lane.b32.xlu1 %v718_v42, %s867_s29 }
  0x74   :  { %v76_v9 = vpop.permute.xlu0 %75 }
  0x75   :  { %93 = vrot.lane.b32.xlu0 %v76_v9, %s867_s29  ;;  %v80_v10 = vpop.permute.xlu1 %79  ;;  %v790_v9 = vld [vmem:[%s1183_s3 + $0x30] ss:$8 sps:$4 sm:$0xff]  }
  0x78   :  { %v78_v11 = vpop.permute.xlu0 %77 }
  0x79   :  { %95 = vrot.lane.b32.xlu0 %v78_v11, %s867_s29  ;;  %v82_v12 = vpop.permute.xlu1 %81 }
  0x7c   :  { %v84_v13 = vpop.permute.xlu0 %83 }
  0x7d   :  { %97 = vrot.lane.b32.xlu0 %v80_v10, %s867_s29  ;;  %v86_v14 = vpop.permute.xlu1 %85  ;;  %v791_v10 = vld [vmem:[%s1183_s3 + $0x70] ss:$8 sps:$4 sm:$0xff]  }
  0x80   :  { %v88_v17 = vpop.permute.xlu0 %87 }
  0x81   :  { %99 = vrot.lane.b32.xlu0 %v82_v12, %s867_s29  ;;  %v108_v18 = vsel %vm105_vm1, %v766_v5, %v88_v17  ;;  %v90_v19 = vpop.permute.xlu1 %89  ;;  %v784_v5 = vld [vmem:[%s1183_s3 + $0x20] ss:$8 sps:$4 sm:$0xff]  }
  0x82   :  { %350 = vmatpush1.bf16.msra.mxu0 %v108_v18  ;;  %748 = vmatpush1.bf16.msra.mxu1 %v108_v18  ;;  %v112_v20 = vsel %vm105_vm1, %v767_v6, %v90_v19  ;;  %v785_v6 = vld [vmem:[%s1183_s3 + $0x60] ss:$8 sps:$4 sm:$0xff]  }
  0x83   :  { %351 = vmatprep.subr.bf16.mxu0 %v866_v4  ;;  %740 = vmatprep.subr.bf16.mxu1 %v866_v4 }
  0x84   :  { %v92_v21 = vpop.permute.xlu0 %91 }
  0x85   :  { %101 = vrot.lane.b32.xlu0 %v84_v13, %s867_s29  ;;  %v115_v22 = vsel %vm105_vm1, %v41_v8, %v92_v21  ;;  %v44_v43 = vpop.permute.xlu1 %43  ;;  %v788_v8 = vld [vmem:[%s1183_s3 + $0x74] ss:$8 sps:$4 sm:$0xff]  }
  0x86   :  { %352 = vmatpush1.bf16.msra.mxu0 %v112_v20  ;;  %749 = vmatpush1.bf16.msra.mxu1 %v112_v20 }
  0x87   :  { %353 = vmatprep.subr.bf16.mxu0 %v866_v4  ;;  %741 = vmatprep.subr.bf16.mxu1 %v866_v4 }
  0x89   :  { %103 = vrot.lane.b32.xlu0 %v86_v14, %s867_s29  ;;  %v46_v44 = vpop.permute.xlu1 %45 }
  0x8a   :  { %354 = vmatpush1.bf16.msra.mxu0 %v115_v22  ;;  %750 = vmatpush1.bf16.msra.mxu1 %v115_v22 }
  0x8b   :  { %355 = vmatprep.subr.bf16.mxu0 %v866_v4  ;;  %742 = vmatprep.subr.bf16.mxu1 %v866_v4 }
  0x8d   :  { %180 = vperm.xlu0 %763, %v158_v24   ;;  %v48_v46 = vpop.permute.xlu1 %47 }
  0x91   :  { %195 = vperm.xlu0 %763, %v161_v26   ;;  %v50_v50 = vpop.permute.xlu1 %49 }
  0x95   :  { %205 = vperm.xlu0 %763, %v163_v28   ;;  %v52_v54 = vpop.permute.xlu1 %51 }
  0x99   :  { %215 = vperm.xlu0 %763, %v165_v30   ;;  %v54_v58 = vpop.permute.xlu1 %53 }
  0x9d   :  { %225 = vperm.xlu0 %763, %v167_v32  }
  0xa1   :  { %235 = vperm.xlu0 %763, %v169_v34  }
  0xa5   :  { %245 = vperm.xlu0 %763, %v171_v36  }
  0xa9   :  { %580 = vrot.lane.b32.xlu0 %v715_v38, %s867_s29 }
  0xaa   :  { %v176_v11 = vpop.permute.xlu1 %175 }
  0xad   :  { %584 = vrot.lane.b32.xlu0 %v717_v40, %s867_s29 }
  0xae   :  { %v186_v12 = vpop.permute.xlu1 %185 }
  0xb2   :  { %v191_v14 = vpop.permute.xlu1 %190 }
  0xb6   :  { %v201_v16 = vpop.permute.xlu1 %200 }
  0xba   :  { %v1084_v18 = vpop.permute.xlu1 %210 }
  0xbe   :  { %v221_v32 = vpop.permute.xlu1 %220 }
  0xe7   :  { %v94_v45 = vpop.permute.xlu0 %93 }
  0xe8   :  { %v119_v47 = vsel %vm105_vm1, %v44_v43, %v94_v45 }
  0xe9   :  { %356 = vmatpush1.bf16.msra.mxu0 %v119_v47  ;;  %751 = vmatpush1.bf16.msra.mxu1 %v119_v47 }
  0xea   :  { %357 = vmatprep.subr.bf16.mxu0 %v866_v4  ;;  %743 = vmatprep.subr.bf16.mxu1 %v866_v4 }
  0xeb   :  { %v96_v48 = vpop.permute.xlu0 %95 }
  0xec   :  { %v123_v49 = vsel %vm105_vm1, %v46_v44, %v96_v48 }
  0xed   :  { %358 = vmatpush1.bf16.msra.mxu0 %v123_v49  ;;  %752 = vmatpush1.bf16.msra.mxu1 %v123_v49 }
  0xee   :  { %359 = vmatprep.subr.bf16.mxu0 %v866_v4  ;;  %744 = vmatprep.subr.bf16.mxu1 %v866_v4 }
  0xef   :  { %v98_v51 = vpop.permute.xlu0 %97 }
  0xf0   :  { %v127_v52 = vsel %vm105_vm1, %v48_v46, %v98_v51  ;;  %v231_v46 = vpop.permute.xlu1 %230 }
  0xf1   :  { %360 = vmatpush1.bf16.msra.mxu0 %v127_v52  ;;  %753 = vmatpush1.bf16.msra.mxu1 %v127_v52 }
  0xf2   :  { %361 = vmatprep.subr.bf16.mxu0 %v866_v4  ;;  %745 = vmatprep.subr.bf16.mxu1 %v866_v4 }
  0xf3   :  { %v100_v53 = vpop.permute.xlu0 %99 }
  0xf4   :  { %v131_v55 = vsel %vm105_vm1, %v50_v50, %v100_v53 }
  0xf5   :  { %362 = vmatpush1.bf16.msra.mxu0 %v131_v55  ;;  %754 = vmatpush1.bf16.msra.mxu1 %v131_v55 }
  0xf6   :  { %363 = vmatprep.subr.bf16.mxu0 %v866_v4  ;;  %746 = vmatprep.subr.bf16.mxu1 %v866_v4 }
  0xf7   :  { %v102_v56 = vpop.permute.xlu0 %101 }
  0xf8   :  { %v135_v57 = vsel %vm105_vm1, %v52_v54, %v102_v56 }
  0xf9   :  { %364 = vmatpush1.bf16.msra.mxu0 %v135_v57  ;;  %755 = vmatpush1.bf16.msra.mxu1 %v135_v57 }
  0xfa   :  { %365 = vmatprep.subr.bf16.mxu0 %v866_v4  ;;  %747 = vmatprep.subr.bf16.mxu1 %v866_v4  ;;  %v782_v4 = vld [vmem:[%s1183_s3 + $0x64] ss:$8 sps:$4 sm:$0xff]  }
  0xfb   :  { %v104_v59 = vpop.permute.xlu0 %103 }
  0xfc   :  { %v139_v60 = vsel %vm105_vm1, %v54_v58, %v104_v59 }
  0xfd   :  { %366 = vmatpush1.bf16.msra.mxu0 %v139_v60  ;;  %756 = vmatpush1.bf16.msra.mxu1 %v139_v60 }
 0x100   :  { %382 = vmatmul.mubr.bf16.vlgmr.msra.gmra.mrb[0].mxu0 %v768_v61  ;;  %414 = vmatmul.mubr.bf16.vlgmr.msra.gmra.mrb[0].mxu1 %v771_v62 }
 0x101   :  { %692 = vmatprep.mubr.msk.bf16.mxu0 %vm105_vm1, %v774_v63  ;;  %696 = vmatprep.mubr.msk.bf16.mxu1 %vm105_vm1, %v776_v0 }
 0x108   :  { %390 = vmatmul.mubr.bf16.gmra.mrb[4].mxu0 %v778_v1  ;;  %422 = vmatmul.mubr.bf16.gmra.mrb[4].mxu1 %v779_v2  ;;  %v241_v2 = vpop.permute.xlu1 %240 }
 0x109   :  { %693 = vmatprep.mubr.msk.bf16.mxu0 %vm105_vm1, %v780_v3  ;;  %697 = vmatprep.mubr.msk.bf16.mxu1 %vm105_vm1, %v782_v4 }
 0x10c   :  { %v181_v13 = vpop.permute.xlu0 %180 }
 0x110   :  { %398 = vmatmul.mubr.bf16.gmra.mrb[8].mxu0 %v784_v5  ;;  %430 = vmatmul.mubr.bf16.gmra.mrb[8].mxu1 %v785_v6  ;;  %v196_v15 = vpop.permute.xlu0 %195 }
 0x111   :  { %694 = vmatprep.mubr.msk.bf16.mxu0 %vm105_vm1, %v786_v7  ;;  %698 = vmatprep.mubr.msk.bf16.mxu1 %vm105_vm1, %v788_v8 }
 0x114   :  { %v1082_v17 = vpop.permute.xlu0 %205 }
 0x118   :  { %406 = vmatmul.mubr.bf16.gmra.mrb[12].mxu0 %v790_v9  ;;  %438 = vmatmul.mubr.bf16.gmra.mrb[12].mxu1 %v791_v10  ;;  %v216_v19 = vpop.permute.xlu0 %215 }
 0x11c   :  { %v1086_v33 = vpop.permute.xlu0 %225 }
 0x120   :  { %v236_v48 = vpop.permute.xlu0 %235 }
 0x124   :  { %v246_v8 = vpop.permute.xlu0 %245 }
 0x1d3   :  { %v383_v20 = vpop.f32.mrb[0].mxu0  ;;  %v415_v21 = vpop.f32.mrb[0].mxu1 }
 0x1d4   :  { %v384_v22 = vadd.f32 %v383_v20, %v176_v11  ;;  %v385_v23 = vpop.f32.mrb[1].mxu0  ;;  %v417_v24 = vpop.f32.mrb[1].mxu1  ;;  %v416_v57 = vadd.f32 %v415_v21, %v216_v19 }
 0x1d5   :  { %v386_v25 = vpop.f32.mrb[2].mxu0  ;;  %v418_v26 = vpop.f32.mrb[2].mxu1 }
 0x1d6   :  { %v699_v27 = vmul.f32 -1.442695, %v384_v22  ;;  %v387_v28 = vadd.f32 %v386_v25, %v181_v13  ;;  %v388_v29 = vpop.f32.mrb[3].mxu0  ;;  %v420_v30 = vpop.f32.mrb[3].mxu1  ;;  %v419_v60 = vadd.f32 %v418_v26, %v221_v32  ;;  %v707_v5 = vmul.f32 -1.442695, %v416_v57 }
 0x1d7   :  { %v251_v26 = vpop.permute.xlu1 %250 }
 0x1d8   :  { %792 = vpow2.f32 %v699_v27  ;;  %v700_v31 = vmul.f32 -1.442695, %v387_v28  ;;  %v708_v7 = vmul.f32 -1.442695, %v419_v60 }
 0x1da   :  { %794 = vpow2.f32 %v700_v31 }
 0x1db   :  { %v391_v34 = vpop.f32.mrb[4].mxu0  ;;  %v1088_v35 = vpop.f32.mrb[4].mxu1 }
 0x1dc   :  { %v392_v36 = vadd.f32 %v391_v34, %v186_v12  ;;  %v393_v37 = vpop.f32.mrb[5].mxu0  ;;  %v425_v38 = vpop.f32.mrb[5].mxu1 }
 0x1dd   :  { %v394_v39 = vpop.f32.mrb[6].mxu0  ;;  %v1090_v40 = vpop.f32.mrb[6].mxu1 }
 0x1de   :  { %v701_v41 = vmul.f32 -1.442695, %v392_v36  ;;  %v395_v42 = vadd.f32 %v394_v39, %v191_v14  ;;  %v396_v43 = vpop.f32.mrb[7].mxu0  ;;  %v428_v44 = vpop.f32.mrb[7].mxu1  ;;  %v427_v32 = vadd.f32 %v1090_v40, %v231_v46 }
 0x1e0   :  { %796 = vpow2.f32 %v701_v41  ;;  %v702_v45 = vmul.f32 -1.442695, %v395_v42  ;;  %v710_v43 = vmul.f32 -1.442695, %v427_v32 }
 0x1e2   :  { %v793_v47 = vpop.eup %792  ;;  %798 = vpow2.f32 %v702_v45 }
 0x1e3   :  { %v458_v49 = vadd.f32 1.0, %v793_v47  ;;  %v399_v50 = vpop.f32.mrb[8].mxu0  ;;  %v431_v51 = vpop.f32.mrb[8].mxu1 }
 0x1e4   :  { %v795_v52 = vpop.eup %794  ;;  %v400_v53 = vadd.f32 %v399_v50, %v196_v15  ;;  %v401_v54 = vpop.f32.mrb[9].mxu0  ;;  %v432_v62 = vadd.f32 %v431_v51, %v236_v48 }
 0x1e5   :  { %v433_v55 = vpop.f32.mrb[9].mxu1  ;;  %v459_v56 = vadd.f32 1.0, %v795_v52  ;;  %v402_v58 = vpop.f32.mrb[10].mxu0  ;;  %800 = vrcp.f32 %v458_v49 }
 0x1e6   :  { %v434_v59 = vpop.f32.mrb[10].mxu1  ;;  %v703_v61 = vmul.f32 -1.442695, %v400_v53  ;;  %v403_v63 = vadd.f32 %v402_v58, %v201_v16  ;;  %v404_v0 = vpop.f32.mrb[11].mxu0  ;;  %v522_v53 = vld [vmem:[%s1185_s2] sm:$0xff]  ;;  %v523_v58 = vld [vmem:[%s1185_s2 + $0x8] sm:$0xff] }
 0x1e7   :  { %v436_v1 = vpop.f32.mrb[11].mxu1  ;;  %802 = vrcp.f32 %v459_v56  ;;  %v435_v4 = vadd.f32 %v434_v59, %v241_v2  ;;  %v581_v54 = vpop.permute.xlu0 %580 }
 0x1e8   :  { %v704_v3 = vmul.f32 -1.442695, %v403_v63  ;;  %804 = vpow2.f32 %v703_v61  ;;  %v583_v59 = vpop.permute.xlu1 %582 }
 0x1e9   :  { %806 = vtanh.f32 %v432_v62 }
 0x1ea   :  { %v797_v6 = vpop.eup %796  ;;  %808 = vpow2.f32 %v704_v3 }
 0x1eb   :  { %v460_v9 = vadd.f32 1.0, %v797_v6  ;;  %v407_v10 = vpop.f32.mrb[12].mxu0  ;;  %v439_v11 = vpop.f32.mrb[12].mxu1  ;;  %810 = vtanh.f32 %v435_v4 }
 0x1ec   :  { %v799_v12 = vpop.eup %798  ;;  %v408_v13 = vadd.f32 %v407_v10, %v1082_v17  ;;  %v409_v14 = vpop.f32.mrb[13].mxu0  ;;  %812 = vpow2.f32 %v707_v5  ;;  %v440_v22 = vadd.f32 %v439_v11, %v246_v8  ;;  %v424_v17 = vadd.f32 %v1088_v35, %v1086_v33  ;;  %v524_v8 = vld [vmem:[%s1185_s2 + $0x10] sm:$0xff] }
 0x1ed   :  { %v441_v15 = vpop.f32.mrb[13].mxu1  ;;  %v461_v16 = vadd.f32 1.0, %v799_v12  ;;  %v410_v19 = vpop.f32.mrb[14].mxu0  ;;  %814 = vpow2.f32 %v708_v7  ;;  %v525_v12 = vld [vmem:[%s1185_s2 + $0x18] sm:$0xff] }
 0x1ee   :  { %v442_v20 = vpop.f32.mrb[14].mxu1  ;;  %v705_v21 = vmul.f32 -1.442695, %v408_v13  ;;  %v411_v23 = vadd.f32 %v410_v19, %v1084_v18  ;;  %v412_v24 = vpop.f32.mrb[15].mxu0  ;;  %816 = vrcp.f32 %v460_v9  ;;  %v709_v37 = vmul.f32 -1.442695, %v424_v17 }
 0x1ef   :  { %v444_v25 = vpop.f32.mrb[15].mxu1  ;;  %818 = vrcp.f32 %v461_v16  ;;  %v443_v28 = vadd.f32 %v442_v20, %v251_v26  ;;  %v801_v29 = vpop.eup %800 }
 0x1f0   :  { %v706_v27 = vmul.f32 -1.442695, %v411_v23  ;;  %820 = vpow2.f32 %v705_v21  ;;  %v585_v9 = vpop.permute.xlu0 %584  ;;  %v587_v13 = vpop.permute.xlu1 %586 }
 0x1f1   :  { %v803_v30 = vpop.eup %802  ;;  %822 = vtanh.f32 %v440_v22 }
 0x1f2   :  { %v805_v31 = vpop.eup %804  ;;  %824 = vpow2.f32 %v706_v27 }
 0x1f3   :  { %v807_v34 = vpop.eup %806  ;;  %v482_v18 = vadd.f32 1.0, %v805_v31  ;;  %826 = vtanh.f32 %v443_v28 }
 0x1f4   :  { %v809_v36 = vpop.eup %808  ;;  %v530_v38 = vmul.f32 %v807_v34, %v801_v29 }
 0x1f5   :  { %v811_v39 = vpop.eup %810  ;;  %828 = vrcp.f32 %v482_v18  ;;  %v483_v41 = vadd.f32 1.0, %v809_v36 }
 0x1f6   :  { %v813_v42 = vpop.eup %812  ;;  %v531_v44 = vmul.f32 %v811_v39, %v803_v30 }
 0x1f7   :  { %v815_v33 = vpop.eup %814  ;;  %830 = vrcp.f32 %v483_v41  ;;  %v506_v51 = vadd.f32 1.0, %v813_v42 }
 0x1f8   :  { %v817_v35 = vpop.eup %816  ;;  %832 = vpow2.f32 %v709_v37  ;;  %v507_v57 = vadd.f32 1.0, %v815_v33 }
 0x1f9   :  { %v819_v45 = vpop.eup %818  ;;  %834 = vpow2.f32 %v710_v43 }
 0x1fa   :  { %v821_v47 = vpop.eup %820 }
 0x1fb   :  { %v823_v40 = vpop.eup %822  ;;  %v484_v46 = vadd.f32 1.0, %v821_v47 }
 0x1fc   :  { %v825_v48 = vpop.eup %824  ;;  %v532_v49 = vmul.f32 %v823_v40, %v817_v35 }
 0x1fd   :  { %v827_v50 = vpop.eup %826  ;;  %836 = vrcp.f32 %v484_v46  ;;  %v485_v52 = vadd.f32 1.0, %v825_v48 }
 0x1fe   :  { %v533_v55 = vmul.f32 %v827_v50, %v819_v45 }
 0x1ff   :  { %v829_v56 = vpop.eup %828  ;;  %838 = vrcp.f32 %v485_v52 }
 0x200   :  { %v526_v60 = vmul.f32 %v829_v56, %v522_v53  ;;  %v592_v61 = vmul.f32 %v829_v56, %v581_v54  ;;  %840 = vrcp.f32 %v506_v51 }
 0x201   :  { %v831_v62 = vpop.eup %830  ;;  %842 = vrcp.f32 %v507_v57 }
 0x202   :  { %v833_v63 = vpop.eup %832  ;;  %v534_v0 = vadd.f32 %v530_v38, %v526_v60  ;;  %v596_v1 = vadd.f32 %v592_v61, %v530_v38  ;;  %v527_v2 = vmul.f32 %v831_v62, %v523_v58  ;;  %v593_v3 = vmul.f32 %v831_v62, %v583_v59 }
 0x203   :  { %v835_v4 = vpop.eup %834  ;;  %v508_v7 = vadd.f32 1.0, %v833_v63 }
 0x204   :  { %844 = vtanh.f32 %v534_v0  ;;  %567 = vst.msk [vmem:[%s1186_s6] sm:$0xff] %vm105_vm1, %v534_v0  ;;  %v535_v5 = vadd.f32 %v531_v44, %v527_v2  ;;  %v597_v6 = vadd.f32 %v593_v3, %v531_v44  ;;  %641 = vrot.lane.b32.xlu0 %v596_v1, %s868_s10  ;;  %v509_v11 = vadd.f32 1.0, %v835_v4 }
 0x205   :  { %846 = vtanh.f32 %v596_v1 }
 0x206   :  { %848 = vtanh.f32 %v535_v5  ;;  %568 = vst.msk [vmem:[%s1186_s6 + $0x8] sm:$0xff] %vm105_vm1, %v535_v5  ;;  %643 = vrot.lane.b32.xlu1 %v597_v6, %s868_s10 }
 0x207   :  { %v837_v10 = vpop.eup %836  ;;  %850 = vtanh.f32 %v597_v6 }
 0x208   :  { %v528_v14 = vmul.f32 %v837_v10, %v524_v8  ;;  %v594_v15 = vmul.f32 %v837_v10, %v585_v9  ;;  %852 = vrcp.f32 %v508_v7 }
 0x209   :  { %v839_v16 = vpop.eup %838  ;;  %854 = vrcp.f32 %v509_v11 }
 0x20a   :  { %v536_v19 = vadd.f32 %v532_v49, %v528_v14  ;;  %v598_v20 = vadd.f32 %v594_v15, %v532_v49  ;;  %v529_v21 = vmul.f32 %v839_v16, %v525_v12  ;;  %v595_v22 = vmul.f32 %v839_v16, %v587_v13  ;;  %v841_v23 = vpop.eup %840 }
 0x20b   :  { %v843_v26 = vpop.eup %842 }
 0x20c   :  { %856 = vtanh.f32 %v536_v19  ;;  %569 = vst.msk [vmem:[%s1186_s6 + $0x10] sm:$0xff] %vm105_vm1, %v536_v19  ;;  %v537_v24 = vadd.f32 %v533_v55, %v529_v21  ;;  %v599_v25 = vadd.f32 %v595_v22, %v533_v55 }
 0x20d   :  { %858 = vtanh.f32 %v598_v20 }
 0x20e   :  { %v845_v27 = vpop.eup %844  ;;  %860 = vtanh.f32 %v537_v24  ;;  %570 = vst.msk [vmem:[%s1186_s6 + $0x18] sm:$0xff] %vm105_vm1, %v537_v24 }
 0x20f   :  { %v847_v28 = vpop.eup %846  ;;  %v542_v29 = vmul.f32 %v845_v27, %v841_v23  ;;  %862 = vtanh.f32 %v599_v25 }
 0x210   :  { %v849_v17 = vpop.eup %848  ;;  %v604_v30 = vmul.f32 %v847_v28, %v841_v23 }
 0x211   :  { %v851_v31 = vpop.eup %850  ;;  %v731_v32 = vpack.c.bf16 %v542_v29, %v542_v29  ;;  %v543_v34 = vmul.f32 %v849_v17, %v843_v26 }
 0x212   :  { %v735_v18 = vpack.c.bf16 %v604_v30, %v604_v30  ;;  %v605_v36 = vmul.f32 %v851_v31, %v843_v26  ;;  %v853_v37 = vpop.eup %852 }
 0x213   :  { %v732_v38 = vpack.c.bf16 %v543_v34, %v543_v34  ;;  %563 = vst.msk [vmem:[%s1187_s5] sm:$0xf] %vm562_vm2, %v731_v32  ;;  %v855_v41 = vpop.eup %854 }
 0x214   :  { %620 = vrot.lane.b32.xlu0 %v735_v18, %s868_s10  ;;  %v736_v39 = vpack.c.bf16 %v605_v36, %v605_v36 }
 0x215   :  { %564 = vst.msk [vmem:[%s1187_s5 + $0x4] sm:$0xf] %vm562_vm2, %v732_v38 }
 0x216   :  { %v857_v42 = vpop.eup %856  ;;  %622 = vrot.lane.b32.xlu1 %v736_v39, %s868_s10 }
 0x217   :  { %v859_v43 = vpop.eup %858  ;;  %v544_v44 = vmul.f32 %v857_v42, %v853_v37 }
 0x218   :  { %v861_v33 = vpop.eup %860  ;;  %v606_v35 = vmul.f32 %v859_v43, %v853_v37 }
 0x219   :  { %v863_v45 = vpop.eup %862  ;;  %v733_v47 = vpack.c.bf16 %v544_v44, %v544_v44  ;;  %v545_v40 = vmul.f32 %v861_v33, %v855_v41 }
 0x21a   :  { %v737_v46 = vpack.c.bf16 %v606_v35, %v606_v35  ;;  %v607_v48 = vmul.f32 %v863_v45, %v855_v41 }
 0x21b   :  { %v734_v49 = vpack.c.bf16 %v545_v40, %v545_v40  ;;  %565 = vst.msk [vmem:[%s1187_s5 + $0x8] sm:$0xf] %vm562_vm2, %v733_v47 }
 0x21c   :  { %624 = vrot.lane.b32.xlu0 %v737_v46, %s868_s10  ;;  %v738_v50 = vpack.c.bf16 %v607_v48, %v607_v48 }
 0x21d   :  { %566 = vst.msk [vmem:[%s1187_s5 + $0xc] sm:$0xf] %vm562_vm2, %v734_v49 }
 0x21e   :  { %626 = vrot.lane.b32.xlu1 %v738_v50, %s868_s10 }
 0x220   :  { %645 = vrot.lane.b32.xlu0 %v598_v20, %s868_s10 }
 0x222   :  { %647 = vrot.lane.b32.xlu1 %v599_v25, %s868_s10 }
 0x276   :  { %v642_v51 = vpop.permute.xlu0 %641 }
 0x277   :  { %727 = vst.msk [vmem:[%s1186_s6 + $0x20] sm:$0xff] %vm105_vm1, %v642_v51 }
 0x278   :  { %v644_v52 = vpop.permute.xlu1 %643 }
 0x279   :  { %728 = vst.msk [vmem:[%s1186_s6 + $0x28] sm:$0xff] %vm105_vm1, %v644_v52 }
 0x286   :  { %v621_v53 = vpop.permute.xlu0 %620 }
 0x287   :  { %723 = vst.msk [vmem:[%s1187_s5 + $0x10] sm:$0xf] %vm562_vm2, %v621_v53 }
 0x288   :  { %v623_v54 = vpop.permute.xlu1 %622 }
 0x289   :  { %724 = vst.msk [vmem:[%s1187_s5 + $0x14] sm:$0xf] %vm562_vm2, %v623_v54 }
 0x28e   :  { %v625_v55 = vpop.permute.xlu0 %624 }
 0x28f   :  { %725 = vst.msk [vmem:[%s1187_s5 + $0x18] sm:$0xf] %vm562_vm2, %v625_v55 }
 0x290   :  { %v627_v56 = vpop.permute.xlu1 %626 }
 0x291   :  { %726 = vst.msk [vmem:[%s1187_s5 + $0x1c] sm:$0xf] %vm562_vm2, %v627_v56 }
 0x292   :  { %v646_v57 = vpop.permute.xlu0 %645 }
 0x293   :  { %729 = vst.msk [vmem:[%s1186_s6 + $0x30] sm:$0xff] %vm105_vm1, %v646_v57 }
 0x294   :  { %v648_v58 = vpop.permute.xlu1 %647 }
 0x295   :  { %730 = vst.msk [vmem:[%s1186_s6 + $0x38] sm:$0xff] %vm105_vm1, %v648_v58 }

</bundles_post_ra>
